<compile_context>
chip_gen: v7x
topology: tpu7x:2x2x1
jax: 0.10.0
libtpu: 0.0.40
codegen_flags: <defaults>
</compile_context>

<pallas_src>
import functools
import math

import jax
import jax.numpy as jnp
from jax.experimental import pallas as pl
from jax.experimental.pallas import tpu as pltpu


def _mhsa_kernel(q_ref, k_ref, v_ref, bias_ref, w_ref, b_ref, o_ref, *,
                 heads, head_dim, scale):
    # q_ref/o_ref: (Lq, E); k_ref/v_ref: (Lk, E); bias_ref: (1, Lk) additive
    # mask bias; w_ref: (E_out, E_in) PyTorch Linear layout; b_ref: (1, E_out).
    q = q_ref[...]
    k = k_ref[...]
    v = v_ref[...]
    w = w_ref[...]
    bias = bias_ref[...]                                   # (1, Lk): 0 / -1e20

    lq = q.shape[0]
    e_out = w.shape[0]
    acc = jnp.zeros((lq, e_out), jnp.float32)

    # Static unroll over heads: all heads of this batch in one program. Each
    # head is a pair of plain 2-D MXU matmuls (contraction dim is D either
    # way, so this matches a batched einsum in MXU work but lowers robustly).
    for h in range(heads):
        sl = slice(h * head_dim, (h + 1) * head_dim)
        q_h = q[:, sl]                                     # (Lq, D)
        k_h = k[:, sl]                                     # (Lk, D)
        v_h = v[:, sl]                                     # (Lk, D)

        # energy[q, k] = sum_d q[q, d] * k[k, d]   (no explicit k.T)
        s = jax.lax.dot_general(
            q_h, k_h, (((1,), (1,)), ((), ())),
            preferred_element_type=jnp.float32)            # (Lq, Lk) f32

        # masked_fill(mask == 0, -1e20) folded into an additive bias, then the
        # reference's division by sqrt(embed_size).
        logits = (s + bias) * scale
        m = jnp.max(logits, axis=-1, keepdims=True)
        p = jnp.exp(logits - m)                            # unnormalized probs
        denom = jnp.sum(p, axis=-1, keepdims=True)         # (Lq, 1)

        ctx = jnp.dot(p.astype(v_h.dtype), v_h,
                      preferred_element_type=jnp.float32)  # (Lq, D) f32
        # Deferred softmax normalization on the small (Lq, D) tile; vrcp (EUP).
        ctx = ctx * pl.reciprocal(denom, approx=True)

        # Fused fc_out contribution of this head:
        #   concat_h(ctx_h) @ W^T == sum_h ctx_h @ W[:, h*D:(h+1)*D]^T
        w_h = w[:, sl]                                     # (E_out, D)
        acc = acc + jax.lax.dot_general(
            ctx, w_h, (((1,), (1,)), ((), ())),
            preferred_element_type=jnp.float32)            # (Lq, E_out)

    o_ref[...] = (acc + b_ref[...]).astype(o_ref.dtype)


def multi_head_self_attention(values, keys, query, mask, params, *, heads):
    N, Lq, E = query.shape
    Lk = keys.shape[1]
    Lv = values.shape[1]
    D = E // heads
    assert D * heads == E, "Embedding size needs to be divisible by heads"
    assert Lk == Lv

    # Reference scales by 1/sqrt(embed_size), not 1/sqrt(head_dim). Keep it.
    scale = 1.0 / math.sqrt(E)

    # Additive mask bias computed once outside the hot loop.
    mask_bias = jnp.where(mask == 0, jnp.float32(-1e20),
                          jnp.float32(0.0)).reshape(N, 1, Lk)

    w_out = params["fc_out_w"]                  # (E_out, E_in), PyTorch layout
    b_out = params["fc_out_b"].reshape(1, E)

    kernel = functools.partial(_mhsa_kernel, heads=heads, head_dim=D,
                               scale=scale)

    out = pl.pallas_call(
        kernel,
        out_shape=jax.ShapeDtypeStruct((N, Lq, E), query.dtype),
        grid_spec=pltpu.PrefetchScalarGridSpec(
            num_scalar_prefetch=0,
            grid=(N,),
            in_specs=[
                pl.BlockSpec((None, Lq, E), lambda n: (n, 0, 0)),   # query
                pl.BlockSpec((None, Lk, E), lambda n: (n, 0, 0)),   # keys
                pl.BlockSpec((None, Lv, E), lambda n: (n, 0, 0)),   # values
                pl.BlockSpec((None, 1, Lk), lambda n: (n, 0, 0)),   # mask bias
                pl.BlockSpec((E, E), lambda n: (0, 0)),             # fc_out W (resident)
                pl.BlockSpec((1, E), lambda n: (0, 0)),             # fc_out b (resident)
            ],
            out_specs=pl.BlockSpec((None, Lq, E), lambda n: (n, 0, 0)),
        ),
        compiler_params=pltpu.CompilerParams(
            dimension_semantics=("parallel",)),
    )(query, keys, values, mask_bias, w_out, b_out)
    return out


def ref_forward(values, keys, query, mask, params, heads):
    """Pure-JAX reference mirroring the PyTorch forward, for validation."""
    N, Lq, E = query.shape
    D = E // heads
    q = query.reshape(N, Lq, heads, D)
    k = keys.reshape(N, keys.shape[1], heads, D)
    v = values.reshape(N, values.shape[1], heads, D)
    energy = jnp.einsum('nqhd,nkhd->nhqk', q, k)
    m = mask[:, None, None, :]
    energy = jnp.where(m == 0, jnp.float32(-1e20), energy)
    attn = jax.nn.softmax(energy / math.sqrt(E), axis=3)
    out = jnp.einsum('nhql,nlhd->nqhd', attn, v).reshape(N, Lq, E)
    return out @ params["fc_out_w"].T + params["fc_out_b"]


if __name__ == "__main__":
    embed_size, heads = 32, 4
    N, seq = 2, 8

    key = jax.random.PRNGKey(0)
    k1, k2, k3, k4, k5, k6 = jax.random.split(key, 6)

    values = jax.random.normal(k1, (N, seq, embed_size), jnp.float32)
    keys_in = jax.random.normal(k2, (N, seq, embed_size), jnp.float32)
    query = jax.random.normal(k3, (N, seq, embed_size), jnp.float32)
    mask = (jax.random.uniform(k4, (N, seq)) > 0.2).astype(jnp.int32)
    mask = mask.at[:, 0].set(1)  # at least one visible key per row

    params = {
        # deterministic synthetic weights (PyTorch Linear layout: (out, in))
        "fc_out_w": 0.1 * jax.random.normal(k5, (embed_size, embed_size),
                                            jnp.float32),
        "fc_out_b": 0.1 * jax.random.normal(k6, (embed_size,), jnp.float32),
    }
    # TODO(synk): self.values/self.keys/self.queries Linear layers exist in the
    # PyTorch __init__ but are never applied in forward(), so no params here.

    out = multi_head_self_attention(values, keys_in, query, mask, params,
                                    heads=heads)
    out = jax.block_until_ready(out)

    ref = ref_forward(values, keys_in, query, mask, params, heads)
    assert out.shape == (N, seq, embed_size)
    # Tolerance covers the EUP approximate-reciprocal softmax normalization.
    assert jnp.allclose(out, ref, atol=2e-3, rtol=2e-3)
    print("KERNEL_OK")
</pallas_src>

<mosaic_0001>
module attributes {stable_mosaic.version = 11 : i64} {
  func.func @_mhsa_kernel(%arg0: i32, %arg1: memref<1x8x32xf32, #tpu.memory_space<vmem>>, %arg2: memref<1x8x32xf32, #tpu.memory_space<vmem>>, %arg3: memref<1x8x32xf32, #tpu.memory_space<vmem>>, %arg4: memref<1x1x8xf32, #tpu.memory_space<vmem>>, %arg5: memref<32x32xf32, #tpu.memory_space<vmem>>, %arg6: memref<1x32xf32, #tpu.memory_space<vmem>>, %arg7: memref<1x8x32xf32, #tpu.memory_space<vmem>>) attributes {dimension_semantics = [#tpu.dimension_semantics<parallel>], iteration_bounds = array<i64: 2>, scalar_prefetch = 0 : i64, scratch_operands = 0 : i64, tpu.core_type = #tpu.core_type<tc>, window_params = [{transform_indices = @transform_0, window_bounds = array<i64: 1, 8, 32>}, {transform_indices = @transform_1, window_bounds = array<i64: 1, 8, 32>}, {transform_indices = @transform_2, window_bounds = array<i64: 1, 8, 32>}, {transform_indices = @transform_3, window_bounds = array<i64: 1, 1, 8>}, {pipeline_mode = #tpu.pipeline_mode<synchronous>, transform_indices = @transform_4, window_bounds = array<i64: 32, 32>}, {pipeline_mode = #tpu.pipeline_mode<synchronous>, transform_indices = @transform_5, window_bounds = array<i64: 1, 32>}, {transform_indices = @transform_6, window_bounds = array<i64: 1, 8, 32>}]} {
    %c0 = arith.constant 0 : index
    %c0_0 = arith.constant 0 : index
    %c0_1 = arith.constant 0 : index
    %0 = vector.load %arg1[%c0, %c0_0, %c0_1] : memref<1x8x32xf32, #tpu.memory_space<vmem>>, vector<1x8x32xf32>
    %1 = vector.shape_cast %0 : vector<1x8x32xf32> to vector<8x32xf32>
    %c0_2 = arith.constant 0 : index
    %c0_3 = arith.constant 0 : index
    %c0_4 = arith.constant 0 : index
    %2 = vector.load %arg2[%c0_2, %c0_3, %c0_4] : memref<1x8x32xf32, #tpu.memory_space<vmem>>, vector<1x8x32xf32>
    %3 = vector.shape_cast %2 : vector<1x8x32xf32> to vector<8x32xf32>
    %c0_5 = arith.constant 0 : index
    %c0_6 = arith.constant 0 : index
    %c0_7 = arith.constant 0 : index
    %4 = vector.load %arg3[%c0_5, %c0_6, %c0_7] : memref<1x8x32xf32, #tpu.memory_space<vmem>>, vector<1x8x32xf32>
    %5 = vector.shape_cast %4 : vector<1x8x32xf32> to vector<8x32xf32>
    %c0_8 = arith.constant 0 : index
    %c0_9 = arith.constant 0 : index
    %6 = vector.load %arg5[%c0_8, %c0_9] : memref<32x32xf32, #tpu.memory_space<vmem>>, vector<32x32xf32>
    %c0_10 = arith.constant 0 : index
    %c0_11 = arith.constant 0 : index
    %c0_12 = arith.constant 0 : index
    %7 = vector.load %arg4[%c0_10, %c0_11, %c0_12] : memref<1x1x8xf32, #tpu.memory_space<vmem>>, vector<1x1x8xf32>
    %8 = vector.shape_cast %7 : vector<1x1x8xf32> to vector<1x8xf32>
    %cst = arith.constant 0.000000e+00 : f32
    %9 = vector.broadcast %cst : f32 to vector<8x32xf32>
    %10 = vector.extract_strided_slice %1 {offsets = [0, 0], sizes = [8, 8], strides = [1, 1]} : vector<8x32xf32> to vector<8x8xf32>
    %11 = vector.extract_strided_slice %3 {offsets = [0, 0], sizes = [8, 8], strides = [1, 1]} : vector<8x32xf32> to vector<8x8xf32>
    %12 = vector.extract_strided_slice %5 {offsets = [0, 0], sizes = [8, 8], strides = [1, 1]} : vector<8x32xf32> to vector<8x8xf32>
    %cst_13 = arith.constant dense<0.000000e+00> : vector<8x8xf32>
    %13 = tpu.matmul %10, %11, %cst_13 {dimension_numbers = #tpu.dot_dimension_numbers<[1], [1], [0], [0], [0, 0, 1, 0], [], []>} : vector<8x8xf32>, vector<8x8xf32>, vector<8x8xf32> -> vector<8x8xf32>
    %14 = vector.broadcast %8 : vector<1x8xf32> to vector<8x8xf32>
    %15 = arith.addf %13, %14 : vector<8x8xf32>
    %cst_14 = arith.constant 0.176776692 : f32
    %16 = vector.broadcast %cst_14 : f32 to vector<8x8xf32>
    %17 = arith.mulf %15, %16 : vector<8x8xf32>
    %cst_15 = arith.constant dense<0xFF800000> : vector<8xf32>
    %18 = vector.multi_reduction <maximumf>, %17, %cst_15 [1] : vector<8x8xf32> to vector<8xf32>
    %19 = vector.shape_cast %18 : vector<8xf32> to vector<8x1xf32>
    %20 = vector.broadcast %19 : vector<8x1xf32> to vector<8x8xf32>
    %21 = arith.subf %17, %20 : vector<8x8xf32>
    %22 = math.exp %21 : vector<8x8xf32>
    %cst_16 = arith.constant dense<0.000000e+00> : vector<8xf32>
    %23 = vector.multi_reduction <add>, %22, %cst_16 [1] : vector<8x8xf32> to vector<8xf32>
    %24 = vector.shape_cast %23 : vector<8xf32> to vector<8x1xf32>
    %cst_17 = arith.constant dense<0.000000e+00> : vector<8x8xf32>
    %25 = tpu.matmul %22, %12, %cst_17 {dimension_numbers = #tpu.dot_dimension_numbers<[1], [0], [0], [1], [0, 0, 1, 1], [], []>} : vector<8x8xf32>, vector<8x8xf32>, vector<8x8xf32> -> vector<8x8xf32>
    %26 = tpu.reciprocal %24 {approx = true} : vector<8x1xf32> -> vector<8x1xf32>
    %27 = vector.broadcast %26 : vector<8x1xf32> to vector<8x8xf32>
    %28 = arith.mulf %25, %27 : vector<8x8xf32>
    %29 = vector.extract_strided_slice %6 {offsets = [0, 0], sizes = [32, 8], strides = [1, 1]} : vector<32x32xf32> to vector<32x8xf32>
    %cst_18 = arith.constant dense<0.000000e+00> : vector<8x32xf32>
    %30 = tpu.matmul %28, %29, %cst_18 {dimension_numbers = #tpu.dot_dimension_numbers<[1], [1], [0], [0], [0, 0, 1, 0], [], []>} : vector<8x8xf32>, vector<32x8xf32>, vector<8x32xf32> -> vector<8x32xf32>
    %31 = arith.addf %9, %30 : vector<8x32xf32>
    %32 = vector.extract_strided_slice %1 {offsets = [0, 8], sizes = [8, 8], strides = [1, 1]} : vector<8x32xf32> to vector<8x8xf32>
    %33 = vector.extract_strided_slice %3 {offsets = [0, 8], sizes = [8, 8], strides = [1, 1]} : vector<8x32xf32> to vector<8x8xf32>
    %34 = vector.extract_strided_slice %5 {offsets = [0, 8], sizes = [8, 8], strides = [1, 1]} : vector<8x32xf32> to vector<8x8xf32>
    %cst_19 = arith.constant dense<0.000000e+00> : vector<8x8xf32>
    %35 = tpu.matmul %32, %33, %cst_19 {dimension_numbers = #tpu.dot_dimension_numbers<[1], [1], [0], [0], [0, 0, 1, 0], [], []>} : vector<8x8xf32>, vector<8x8xf32>, vector<8x8xf32> -> vector<8x8xf32>
    %36 = vector.broadcast %8 : vector<1x8xf32> to vector<8x8xf32>
    %37 = arith.addf %35, %36 : vector<8x8xf32>
    %cst_20 = arith.constant 0.176776692 : f32
    %38 = vector.broadcast %cst_20 : f32 to vector<8x8xf32>
    %39 = arith.mulf %37, %38 : vector<8x8xf32>
    %cst_21 = arith.constant dense<0xFF800000> : vector<8xf32>
    %40 = vector.multi_reduction <maximumf>, %39, %cst_21 [1] : vector<8x8xf32> to vector<8xf32>
    %41 = vector.shape_cast %40 : vector<8xf32> to vector<8x1xf32>
    %42 = vector.broadcast %41 : vector<8x1xf32> to vector<8x8xf32>
    %43 = arith.subf %39, %42 : vector<8x8xf32>
    %44 = math.exp %43 : vector<8x8xf32>
    %cst_22 = arith.constant dense<0.000000e+00> : vector<8xf32>
    %45 = vector.multi_reduction <add>, %44, %cst_22 [1] : vector<8x8xf32> to vector<8xf32>
    %46 = vector.shape_cast %45 : vector<8xf32> to vector<8x1xf32>
    %cst_23 = arith.constant dense<0.000000e+00> : vector<8x8xf32>
    %47 = tpu.matmul %44, %34, %cst_23 {dimension_numbers = #tpu.dot_dimension_numbers<[1], [0], [0], [1], [0, 0, 1, 1], [], []>} : vector<8x8xf32>, vector<8x8xf32>, vector<8x8xf32> -> vector<8x8xf32>
    %48 = tpu.reciprocal %46 {approx = true} : vector<8x1xf32> -> vector<8x1xf32>
    %49 = vector.broadcast %48 : vector<8x1xf32> to vector<8x8xf32>
    %50 = arith.mulf %47, %49 : vector<8x8xf32>
    %51 = vector.extract_strided_slice %6 {offsets = [0, 8], sizes = [32, 8], strides = [1, 1]} : vector<32x32xf32> to vector<32x8xf32>
    %cst_24 = arith.constant dense<0.000000e+00> : vector<8x32xf32>
    %52 = tpu.matmul %50, %51, %cst_24 {dimension_numbers = #tpu.dot_dimension_numbers<[1], [1], [0], [0], [0, 0, 1, 0], [], []>} : vector<8x8xf32>, vector<32x8xf32>, vector<8x32xf32> -> vector<8x32xf32>
    %53 = arith.addf %31, %52 : vector<8x32xf32>
    %54 = vector.extract_strided_slice %1 {offsets = [0, 16], sizes = [8, 8], strides = [1, 1]} : vector<8x32xf32> to vector<8x8xf32>
    %55 = vector.extract_strided_slice %3 {offsets = [0, 16], sizes = [8, 8], strides = [1, 1]} : vector<8x32xf32> to vector<8x8xf32>
    %56 = vector.extract_strided_slice %5 {offsets = [0, 16], sizes = [8, 8], strides = [1, 1]} : vector<8x32xf32> to vector<8x8xf32>
    %cst_25 = arith.constant dense<0.000000e+00> : vector<8x8xf32>
    %57 = tpu.matmul %54, %55, %cst_25 {dimension_numbers = #tpu.dot_dimension_numbers<[1], [1], [0], [0], [0, 0, 1, 0], [], []>} : vector<8x8xf32>, vector<8x8xf32>, vector<8x8xf32> -> vector<8x8xf32>
    %58 = vector.broadcast %8 : vector<1x8xf32> to vector<8x8xf32>
    %59 = arith.addf %57, %58 : vector<8x8xf32>
    %cst_26 = arith.constant 0.176776692 : f32
    %60 = vector.broadcast %cst_26 : f32 to vector<8x8xf32>
    %61 = arith.mulf %59, %60 : vector<8x8xf32>
    %cst_27 = arith.constant dense<0xFF800000> : vector<8xf32>
    %62 = vector.multi_reduction <maximumf>, %61, %cst_27 [1] : vector<8x8xf32> to vector<8xf32>
    %63 = vector.shape_cast %62 : vector<8xf32> to vector<8x1xf32>
    %64 = vector.broadcast %63 : vector<8x1xf32> to vector<8x8xf32>
    %65 = arith.subf %61, %64 : vector<8x8xf32>
    %66 = math.exp %65 : vector<8x8xf32>
    %cst_28 = arith.constant dense<0.000000e+00> : vector<8xf32>
    %67 = vector.multi_reduction <add>, %66, %cst_28 [1] : vector<8x8xf32> to vector<8xf32>
    %68 = vector.shape_cast %67 : vector<8xf32> to vector<8x1xf32>
    %cst_29 = arith.constant dense<0.000000e+00> : vector<8x8xf32>
    %69 = tpu.matmul %66, %56, %cst_29 {dimension_numbers = #tpu.dot_dimension_numbers<[1], [0], [0], [1], [0, 0, 1, 1], [], []>} : vector<8x8xf32>, vector<8x8xf32>, vector<8x8xf32> -> vector<8x8xf32>
    %70 = tpu.reciprocal %68 {approx = true} : vector<8x1xf32> -> vector<8x1xf32>
    %71 = vector.broadcast %70 : vector<8x1xf32> to vector<8x8xf32>
    %72 = arith.mulf %69, %71 : vector<8x8xf32>
    %73 = vector.extract_strided_slice %6 {offsets = [0, 16], sizes = [32, 8], strides = [1, 1]} : vector<32x32xf32> to vector<32x8xf32>
    %cst_30 = arith.constant dense<0.000000e+00> : vector<8x32xf32>
    %74 = tpu.matmul %72, %73, %cst_30 {dimension_numbers = #tpu.dot_dimension_numbers<[1], [1], [0], [0], [0, 0, 1, 0], [], []>} : vector<8x8xf32>, vector<32x8xf32>, vector<8x32xf32> -> vector<8x32xf32>
    %75 = arith.addf %53, %74 : vector<8x32xf32>
    %76 = vector.extract_strided_slice %1 {offsets = [0, 24], sizes = [8, 8], strides = [1, 1]} : vector<8x32xf32> to vector<8x8xf32>
    %77 = vector.extract_strided_slice %3 {offsets = [0, 24], sizes = [8, 8], strides = [1, 1]} : vector<8x32xf32> to vector<8x8xf32>
    %78 = vector.extract_strided_slice %5 {offsets = [0, 24], sizes = [8, 8], strides = [1, 1]} : vector<8x32xf32> to vector<8x8xf32>
    %cst_31 = arith.constant dense<0.000000e+00> : vector<8x8xf32>
    %79 = tpu.matmul %76, %77, %cst_31 {dimension_numbers = #tpu.dot_dimension_numbers<[1], [1], [0], [0], [0, 0, 1, 0], [], []>} : vector<8x8xf32>, vector<8x8xf32>, vector<8x8xf32> -> vector<8x8xf32>
    %80 = vector.broadcast %8 : vector<1x8xf32> to vector<8x8xf32>
    %81 = arith.addf %79, %80 : vector<8x8xf32>
    %cst_32 = arith.constant 0.176776692 : f32
    %82 = vector.broadcast %cst_32 : f32 to vector<8x8xf32>
    %83 = arith.mulf %81, %82 : vector<8x8xf32>
    %cst_33 = arith.constant dense<0xFF800000> : vector<8xf32>
    %84 = vector.multi_reduction <maximumf>, %83, %cst_33 [1] : vector<8x8xf32> to vector<8xf32>
    %85 = vector.shape_cast %84 : vector<8xf32> to vector<8x1xf32>
    %86 = vector.broadcast %85 : vector<8x1xf32> to vector<8x8xf32>
    %87 = arith.subf %83, %86 : vector<8x8xf32>
    %88 = math.exp %87 : vector<8x8xf32>
    %cst_34 = arith.constant dense<0.000000e+00> : vector<8xf32>
    %89 = vector.multi_reduction <add>, %88, %cst_34 [1] : vector<8x8xf32> to vector<8xf32>
    %90 = vector.shape_cast %89 : vector<8xf32> to vector<8x1xf32>
    %cst_35 = arith.constant dense<0.000000e+00> : vector<8x8xf32>
    %91 = tpu.matmul %88, %78, %cst_35 {dimension_numbers = #tpu.dot_dimension_numbers<[1], [0], [0], [1], [0, 0, 1, 1], [], []>} : vector<8x8xf32>, vector<8x8xf32>, vector<8x8xf32> -> vector<8x8xf32>
    %92 = tpu.reciprocal %90 {approx = true} : vector<8x1xf32> -> vector<8x1xf32>
    %93 = vector.broadcast %92 : vector<8x1xf32> to vector<8x8xf32>
    %94 = arith.mulf %91, %93 : vector<8x8xf32>
    %95 = vector.extract_strided_slice %6 {offsets = [0, 24], sizes = [32, 8], strides = [1, 1]} : vector<32x32xf32> to vector<32x8xf32>
    %cst_36 = arith.constant dense<0.000000e+00> : vector<8x32xf32>
    %96 = tpu.matmul %94, %95, %cst_36 {dimension_numbers = #tpu.dot_dimension_numbers<[1], [1], [0], [0], [0, 0, 1, 0], [], []>} : vector<8x8xf32>, vector<32x8xf32>, vector<8x32xf32> -> vector<8x32xf32>
    %97 = arith.addf %75, %96 : vector<8x32xf32>
    %c0_37 = arith.constant 0 : index
    %c0_38 = arith.constant 0 : index
    %98 = vector.load %arg6[%c0_37, %c0_38] : memref<1x32xf32, #tpu.memory_space<vmem>>, vector<1x32xf32>
    %99 = vector.broadcast %98 : vector<1x32xf32> to vector<8x32xf32>
    %100 = arith.addf %97, %99 : vector<8x32xf32>
    %c0_39 = arith.constant 0 : index
    %c0_40 = arith.constant 0 : index
    %c0_41 = arith.constant 0 : index
    %101 = vector.load %arg7[%c0_39, %c0_40, %c0_41] : memref<1x8x32xf32, #tpu.memory_space<vmem>>, vector<1x8x32xf32>
    %102 = vector.shape_cast %101 : vector<1x8x32xf32> to vector<8x32xf32>
    %103 = vector.shape_cast %100 : vector<8x32xf32> to vector<1x8x32xf32>
    tpu.vector_store %arg7[%c0_39, %c0_40, %c0_41], %103 {strides = array<i32>} : memref<1x8x32xf32, #tpu.memory_space<vmem>>, vector<1x8x32xf32>,
    return
  }
  func.func @transform_0(%arg0: i32) -> (i32, i32, i32) {
    %c0_i32 = arith.constant 0 : i32
    %c0_i32_0 = arith.constant 0 : i32
    %c0_i32_1 = arith.constant 0 : i32
    return %arg0, %c0_i32, %c0_i32_0 : i32, i32, i32
  }
  func.func @transform_1(%arg0: i32) -> (i32, i32, i32) {
    %c0_i32 = arith.constant 0 : i32
    %c0_i32_0 = arith.constant 0 : i32
    %c0_i32_1 = arith.constant 0 : i32
    return %arg0, %c0_i32, %c0_i32_0 : i32, i32, i32
  }
  func.func @transform_2(%arg0: i32) -> (i32, i32, i32) {
    %c0_i32 = arith.constant 0 : i32
    %c0_i32_0 = arith.constant 0 : i32
    %c0_i32_1 = arith.constant 0 : i32
    return %arg0, %c0_i32, %c0_i32_0 : i32, i32, i32
  }
  func.func @transform_3(%arg0: i32) -> (i32, i32, i32) {
    %c0_i32 = arith.constant 0 : i32
    %c0_i32_0 = arith.constant 0 : i32
    %c0_i32_1 = arith.constant 0 : i32
    return %arg0, %c0_i32, %c0_i32_0 : i32, i32, i32
  }
  func.func @transform_4(%arg0: i32) -> (i32, i32) {
    %c0_i32 = arith.constant 0 : i32
    %c0_i32_0 = arith.constant 0 : i32
    %c0_i32_1 = arith.constant 0 : i32
    return %c0_i32, %c0_i32_0 : i32, i32
  }
  func.func @transform_5(%arg0: i32) -> (i32, i32) {
    %c0_i32 = arith.constant 0 : i32
    %c0_i32_0 = arith.constant 0 : i32
    %c0_i32_1 = arith.constant 0 : i32
    return %c0_i32, %c0_i32_0 : i32, i32
  }
  func.func @transform_6(%arg0: i32) -> (i32, i32, i32) {
    %c0_i32 = arith.constant 0 : i32
    %c0_i32_0 = arith.constant 0 : i32
    %c0_i32_1 = arith.constant 0 : i32
    return %arg0, %c0_i32, %c0_i32_0 : i32, i32, i32
  }
}

</mosaic_0001>

<bundles_post_ra>
// kernel: tpu_custom_call.1
= control target key start
LH: loop header
LB: loop body
LE: loop exit
PB: predicated region body
PF: predicated region fallthrough
CT: control target
= control target key end

     0   :  { %s2549_s0 = inlined_call_operand.hbm [shape: f32[2,8,32], index: 0, kind: input, shape index: {}]   ;;  %s2550_s1 = inlined_call_operand.hbm [shape: f32[2,8,32], index: 1, kind: input, shape index: {}]   ;;  %s2551_s2 = inlined_call_operand.hbm [shape: f32[2,8,32], index: 2, kind: input, shape index: {}]   ;;  %s2552_s3 = inlined_call_operand.vmem [shape: f32[2,1,8], index: 3, kind: input, shape index: {}]   ;;  %s2553_s4 = inlined_call_operand.hbm [shape: f32[32,32], index: 4, kind: input, shape index: {}]   ;;  %s2554_s5 = inlined_call_operand.vmem [shape: f32[1,32], index: 5, kind: input, shape index: {}]   ;;  %s2555_s6 = inlined_call_operand.hbm [shape: f32[2,8,32], index: 6, kind: output, shape index: {}]  }
   0x1   :  { %2572 = sst [smem:[#allocation20_spill]] %s2550_s1 }
   0x2   :  { %2573 = sst [smem:[#allocation21_spill]] %s2554_s5 }
   0x3   :  { %2574 = sst [smem:[#allocation22_spill]] %s2555_s6 }
   0x4   :  { %11 = vsyncpa [#allocation3], 0 }
   0x5   :  { %13 = vsyncpa [#allocation3 + $0x1], 0 }
   0x6   :  { %14 = vsyncpa [#allocation6], 0 }
   0x7   :  { %16 = vsyncpa [#allocation6 + $0x1], 0 }
   0x8   :  { %17 = vsyncpa [#allocation9], 0 }
   0x9   :  { %18 = vsyncpa [#allocation4], 0 }
   0xa   :  { %20 = vsyncpa [#allocation4 + $0x1], 0  ;;  %s2121_s21 = smov 0   ;;  %s2123_s22 = smov 0  }
   0xb   :  { %s2125_s23 = smov 0   ;;  %s2127_s24 = smov 0  }
   0xc LB: > { %2575 = sst [smem:[#allocation15_spill]] %s2059_s21  ;;  %s2142_s25 = sadd.s32 1, %s2071_s24   ;;  %s2071_s24 = sphi %s2127_s24, %s2607_s24   ;;  %s2067_s23 = sphi %s2125_s23, %s2611_s23   ;;  %s2063_s22 = sphi %s2123_s22, %s2610_s22   ;;  %s2059_s21 = sphi %s2121_s21, %s2609_s21  }
   0xd   : > { %2576 = sst [smem:[#allocation16_spill]] %s2071_s24  ;;  %s33_s26 = sadd.s32 1, %s2067_s23 }
   0xe   : > { %2577 = sst [smem:[#allocation17_spill]] %s2142_s25  ;;  %s30_s27 = ssub.s32 %s2071_s24, %s2142_s25 }
   0xf   : > { %p2556_p0 = scmp.ne.s32.totalorder %s2067_s23, %s2063_s22  ;;  %p31_p1 = scmp.eq.s32.totalorder %s30_s27, 0 }
  0x10   : > { %p41_p2 = scmp.eq.s32.totalorder %s2071_s24, 0  ;;  %p1789_p4 = scmp.lt.s32.totalorder %s2071_s24, 2 }
  0x11   : > { %s2153_s28 = scalar_select %p31_p1, %s2067_s23, %s33_s26  }
  0x12   : > { %p42_p5 = por %p41_p2, %p2556_p0  ;;  %s2557_s29 = sand.u32 1, %s2067_s23  }
  0x13   : > { %2578 = sst [smem:[#allocation18_spill]] %s2153_s28  ;;  %s2161_s30 = sshll.u32 %s2557_s29, 3 }
  0x14   : > { %s2164_s7 = sshll.u32 %s2071_s24, 7  ;;  %p2166_p6 = pnand %p1789_p4, %p42_p5 }
  0x15   : > { %s250_s9 = sand.u32 1, %s2071_s24   ;;  %s2580_s1 = sld [smem:[#allocation20_spill]] }
  0x16   : > { %s2579_s8 = scalar_select %p2166_p6, 1, 0 }
  0x17   : > { %s254_s13 = scalar_lea.vmem [#allocation5], %s2161_s30  ;;  %s2180_s15 = scalar_lea.sflag [#allocation6], %s250_s9 }
  0x18   : > { %s261_s14 = sshll.u32 %s254_s13, 4  ;;  %p2186_p8 = pneg %p2166_p6  ;;  %s2178_s14 = int_to_ptr.vmem [resolvable:$true] %s261_s14 }
  0x1a   : > { %s2581_s17 = scalar_select %p2186_p8, 1, 0 }
  0x1b   : > { %s2175_s12 = scalar_lea.hbm %s2580_s1, %s2164_s7  ;;  %s1884_s20 = scalar_lea.hbm %s2580_s1, 256 }
  0x1c   : > { %s1879_s16 = scalar_lea.hbm %s2175_s12, 128  ;;  %p1885_p11 = scmp.lt.u32.totalorder %s2175_s12, %s2580_s1 }
  0x1d   : > { %p1880_p7 = scmp.ne.s32.totalorder %s2175_s12, %s1879_s16  ;;  %p1886_p12 = scmp.lt.u32.totalorder %s1884_s20, %s1879_s16 }
  0x1e   : > { %p1888_p1 = scmp.lt.u32.totalorder %s1879_s16, %s2175_s12 }
  0x1f   : > { %p1882_p9 = pnand %p2186_p8, %p1880_p7  ;;  %p1887_p13 = por %p1886_p12, %p1885_p11 }
  0x21   : > { %p1883_p10 = pneg %p1882_p9  ;;  %p1889_p2 = por %p1888_p1, %p1887_p13 }
  0x23   : > { %p1890_p4 = pnand %p1889_p2, %p1883_p10 }
  0x25   : > { %1893 = shalt.err (!%p1890_p4)
}
  0x26   : > { %s1894_s9 = scalar_lea.vmem %s2178_s14, 128  ;;  %s2073_s10 = smov [#allocation5]  }
  0x27   : > { %p1895_p5 = scmp.ne.s32.totalorder %s2178_s14, %s1894_s9  ;;  %s1899_s11 = sshll.u32 %s2073_s10, 4  ;;  %s1900_s11 = int_to_ptr.vmem [resolvable:$false] %s1899_s11 }
  0x28   : > { %s1901_s13 = scalar_lea.vmem %s1900_s11, 256  ;;  %p1902_p3 = scmp.lt.s32.totalorder %s2178_s14, %s1900_s11 }
  0x29   : > { %p1897_p7 = pnand %p1895_p5, %p2186_p8  ;;  %p1903_p0 = scmp.lt.s32.totalorder %s1901_s13, %s1894_s9 }
  0x2b   : > { %p1898_p9 = pneg %p1897_p7  ;;  %p1904_p11 = por %p1903_p0, %p1902_p3 }
  0x2d   : > { %p1905_p12 = pnand %p1904_p11, %p1898_p9 }
  0x2f   : > { %1908 = shalt.err (!%p1905_p12)
}
  0x30   : > { %1780 = dma.hbm_to_vmem [thread:$0]  (!%p2166_p6), %s2175_s12, 128, %s2178_s14, %s2180_s15  }
  0x31   : > { %s2211_s16 = sadd.s32 4294967295, %s2071_s24   ;;  %s1552_s18 = sadd.s32 4294967294, %s2071_s24  }
  0x32   : > { %p46_p0 = scmp.ne.s32.totalorder %s2063_s22, %s2059_s21  ;;  %p2563_p3 = scmp.eq.s32.totalorder %s2211_s16, 0 }
  0x33   : > { %p190_p10 = scmp.eq.s32.totalorder %s2211_s16, 1  ;;  %p196_p13 = scmp.eq.s32.totalorder %s1552_s18, 1 }
  0x34   : > { %p2220_p1 = por %p2563_p3, %p46_p0  ;;  %p1553_p2 = scmp.ge.s32.totalorder %s2071_s24, 1 }
  0x35   : > { %p2583_p4 = scmp.ne.s32.totalorder %s2067_s23, %s2063_s22  ;;  %p2232_p7 = por %p196_p13, %p46_p0 }
  0x36   : > { %s2582_s19 = scalar_select %p2220_p1, 1, 0 }
  0x37   : > { %p2228_p5 = por %p190_p10, %p2583_p4  ;;  %p203_p9 = scmp.lt.s32.totalorder %s2071_s24, 3 }
  0x38   : > { %s2585_s14 = scalar_select %p2232_p7, 1, 0 }
  0x39   : > { %s2584_s12 = scalar_select %p2228_p5, 1, 0 }
  0x3a   : > { %2586 = sst [smem:[#allocation19_spill]] %s2585_s14  ;;  %p2237_p11 = pnand %p1553_p2, %p203_p9 }
  0x3b   : > { %s2074_s26 = smov [#allocation8]   ;;  %s2249_s11 = scalar_lea.hbm %s2549_s0, %s2164_s7 }
  0x3c   : > { %s2587_s20 = scalar_select %p2237_p11, 1, 0 }
  0x3d   : > { %s215_s27 = sshll.u32 %s2074_s26, 4  ;;  %p1770_p12 = pneg %p2237_p11  ;;  %s2241_s27 = int_to_ptr.vmem [resolvable:$true] %s215_s27 }
  0x3e   : > { %s236_s18 = scalar_lea.vmem [#allocation2], %s2161_s30  ;;  %s2264_s28 = scalar_lea.hbm %s2551_s2, %s2164_s7 }
  0x3f   : > { %p2253_p0 = pnand %p1770_p12, %p2563_p3  ;;  %s243_s29 = sshll.u32 %s236_s18, 4  ;;  %s2258_s29 = int_to_ptr.vmem [resolvable:$true] %s243_s29 }
  0x40   : > { %s1909_s9 = scalar_lea.hbm %s2553_s4, 512 }
  0x41   : > { %p1910_p10 = scmp.ne.s32.totalorder %s2553_s4, %s1909_s9  ;;  %p1911_p13 = pneg %p2253_p0 }
  0x42   : > { %p1916_p9 = scmp.lt.u32.totalorder %s1909_s9, %s2553_s4 }
  0x43   : > { %p1912_p2 = pnand %p1911_p13, %p1910_p10 }
  0x45   : > { %p1913_p4 = pneg %p1912_p2 }
  0x47   : > { %p1918_p12 = pnand %p1916_p9, %p1913_p4 }
  0x49   : > { %1921 = shalt.err (!%p1918_p12)
}
  0x4a   : > { %s1922_s1 = scalar_lea.vmem %s2241_s27, 512  ;;  %p1930_p1 = scmp.lt.s32.totalorder %s2241_s27, %s2241_s27 }
  0x4b   : > { %p1923_p3 = scmp.ne.s32.totalorder %s2241_s27, %s1922_s1  ;;  %p1931_p11 = scmp.lt.s32.totalorder %s1922_s1, %s1922_s1 }
  0x4d   : > { %p1925_p7 = pnand %p1923_p3, %p1911_p13  ;;  %p1932_p6 = por %p1931_p11, %p1930_p1 }
  0x4f   : > { %p1926_p5 = pneg %p1925_p7 }
  0x51   : > { %p1933_p8 = pnand %p1932_p6, %p1926_p5 }
  0x53   : > { %1936 = shalt.err (!%p1933_p8)
}
  0x54   : > { %s2075_s24 = smov 128   ;;  %s2076_s21 = smov 8  }
  0x55   : > { %1773 = dma.hbm_to_vmem [thread:$0]  (!%p2253_p0), %s2553_s4, 512, %s2241_s27, [#allocation9], %s2075_s24, %s2075_s24, %s2076_s21  }
  0x56   : > { %s2589_s14 = sand.u32 1, %s2067_s23   ;;  %s1937_s9 = scalar_lea.hbm %s2249_s11, 128 }
  0x57   : > { %s233_s26 = scalar_lea.sflag [#allocation3], %s2589_s14  ;;  %p1938_p6 = scmp.ne.s32.totalorder %s2249_s11, %s1937_s9 }
  0x58   : > { %p2590_p8 = scmp.ne.s32.totalorder %s2581_s17, 0  ;;  %s1942_s1 = scalar_lea.hbm %s2549_s0, 256 }
  0x59   : > { %p1943_p5 = scmp.lt.u32.totalorder %s2249_s11, %s2549_s0  ;;  %p1944_p7 = scmp.lt.u32.totalorder %s1942_s1, %s1937_s9 }
  0x5a   : > { %p1940_p3 = pnand %p1938_p6, %p2590_p8  ;;  %p1946_p10 = scmp.lt.u32.totalorder %s1937_s9, %s2249_s11 }
  0x5b   : > { %p1945_p11 = por %p1944_p7, %p1943_p5 }
  0x5c   : > { %p1941_p1 = pneg %p1940_p3 }
  0x5d   : > { %p1947_p13 = por %p1946_p10, %p1945_p11 }
  0x5f   : > { %p1948_p0 = pnand %p1947_p13, %p1941_p1 }
  0x61   : > { %1951 = shalt.err (!%p1948_p0)
}
  0x62   : > { %s1952_s27 = scalar_lea.vmem %s2258_s29, 128  ;;  %s2077_s13 = smov [#allocation2]  }
  0x63   : > { %p1953_p2 = scmp.ne.s32.totalorder %s2258_s29, %s1952_s27  ;;  %s1957_s24 = sshll.u32 %s2077_s13, 4  ;;  %s1958_s24 = int_to_ptr.vmem [resolvable:$false] %s1957_s24 }
  0x64   : > { %s1959_s5 = scalar_lea.vmem %s1958_s24, 256  ;;  %p1960_p12 = scmp.lt.s32.totalorder %s2258_s29, %s1958_s24 }
  0x65   : > { %p1955_p4 = pnand %p1953_p2, %p2590_p8  ;;  %p1961_p6 = scmp.lt.s32.totalorder %s1959_s5, %s1952_s27 }
  0x67   : > { %p1956_p9 = pneg %p1955_p4  ;;  %p1962_p3 = por %p1961_p6, %p1960_p12 }
  0x69   : > { %p1963_p5 = pnand %p1962_p3, %p1956_p9 }
  0x6b   : > { %1966 = shalt.err (!%p1963_p5)
}
  0x6c   : > { %p2591_p1 = scmp.ne.s32.totalorder %s2579_s8, 0  ;;  %s272_s6 = scalar_lea.vmem [#allocation7], %s2161_s30 }
  0x6d   : > { %s279_s21 = sshll.u32 %s272_s6, 4  ;;  %s1967_s25 = scalar_lea.hbm %s2264_s28, 128  ;;  %s280_s21 = int_to_ptr.vmem [resolvable:$true] %s279_s21 }
  0x6e   : > { %1777 = dma.hbm_to_vmem [thread:$0]  (!%p2591_p1), %s2249_s11, 128, %s2258_s29, %s233_s26  }
  0x6f   : > { %p1968_p7 = scmp.ne.s32.totalorder %s2264_s28, %s1967_s25  ;;  %s1972_s9 = scalar_lea.hbm %s2551_s2, 256 }
  0x70   : > { %p1973_p13 = scmp.lt.u32.totalorder %s2264_s28, %s2551_s2  ;;  %p1974_p0 = scmp.lt.u32.totalorder %s1972_s9, %s1967_s25 }
  0x71   : > { %p1970_p11 = pnand %p1968_p7, %p2590_p8  ;;  %p1976_p4 = scmp.lt.u32.totalorder %s1967_s25, %s2264_s28 }
  0x72   : > { %p1975_p2 = por %p1974_p0, %p1973_p13 }
  0x73   : > { %p1971_p10 = pneg %p1970_p11 }
  0x74   : > { %p1977_p9 = por %p1976_p4, %p1975_p2 }
  0x76   : > { %p1978_p12 = pnand %p1977_p9, %p1971_p10 }
  0x78   : > { %1981 = shalt.err (!%p1978_p12)
}
  0x79   : > { %s1982_s29 = scalar_lea.vmem %s280_s21, 128  ;;  %s2078_s30 = smov [#allocation7]  }
  0x7a   : > { %p1983_p6 = scmp.ne.s32.totalorder %s280_s21, %s1982_s29  ;;  %s1987_s11 = sshll.u32 %s2078_s30, 4  ;;  %s1988_s11 = int_to_ptr.vmem [resolvable:$false] %s1987_s11 }
  0x7b   : > { %s1989_s26 = scalar_lea.vmem %s1988_s11, 256  ;;  %p1990_p7 = scmp.lt.s32.totalorder %s280_s21, %s1988_s11 }
  0x7c   : > { %p1985_p3 = pnand %p1983_p6, %p2590_p8  ;;  %p1991_p11 = scmp.lt.s32.totalorder %s1989_s26, %s1982_s29 }
  0x7e   : > { %p1986_p5 = pneg %p1985_p3  ;;  %p1992_p1 = por %p1991_p11, %p1990_p7 }
  0x80   : > { %p1993_p0 = pnand %p1992_p1, %p1986_p5 }
  0x82   : > { %1996 = shalt.err (!%p1993_p0)
}
  0x83   : > { %p2592_p13 = scmp.ne.s32.totalorder %s2579_s8, 0  ;;  %p2593_p10 = scmp.ne.s32.totalorder %s2587_s20, 0 }
  0x84   : > { %s2332_s17 = sand.u32 (!%p2593_p10), 1, %s2063_s22   ;;  %p2594_p8 = scmp.ne.s32.totalorder (!%p2593_p10), %s2582_s19, 0 }
  0x85   : > { %1783 = dma.hbm_to_vmem [thread:$0]  (!%p2592_p13), %s2264_s28, 128, %s280_s21, %s2180_s15  }
  0x86   : > { %294 = sbr.rel (%p2593_p10) target bundleno = 2320 (0x910), region = 44  ;;  %s2335_s1 = sshll.u32 (!%p2593_p10), %s2332_s17, 3 }
  0x87   : > { %s297_s27 = scalar_lea.sflag (!%p2593_p10), [#allocation3], %s2332_s17  ;;  %s300_s13 = scalar_lea.vmem (!%p2593_p10), [#allocation2], %s2335_s1 }
  0x8d   : > { %2042 = dma.done.wait (%p2594_p8), %s297_s27, 128  }
  0x8e   : > { %2044 = vsyncadd (%p2594_p8), %s297_s27, 4294967168  ;;  %s305_s28 = sand.u32 1, %s2211_s16   ;;  %s309_s15 = scalar_lea.vmem [#allocation5], %s2335_s1 }
  0x8f   : > { %s306_s8 = scalar_lea.sflag [#allocation6], %s305_s28 }
  0x90   : > { %2046 = dma.done.wait (%p2594_p8), %s306_s8, 256  }
  0x91   : > { %2048 = vsyncadd (%p2594_p8), %s306_s8, 4294967040  ;;  %s318_s20 = scalar_lea.vmem [#allocation7], %s2335_s1  ;;  %p2595_p1 = scmp.eq.s32.totalorder %s2211_s16, 0 }
  0x93   : > { %2050 = dma.done.wait (%p2595_p1), [#allocation9], 512   ;;  %p2596_p2 = pmov %p2595_p1 }
  0x94   : > { %v2079_v0 = vmov 0.0   ;;  %vm2080_vm0 = vmmov 0   ;;  %vm381_vm1 = vcmask 64512   ;;  %v2360_v1 = vld [vmem:[%s309_s15] sm:$0xff]  ;;  %v2364_v2 = vld [vmem:[%s300_s13] sm:$0xff]  ;;  %s2081_s19 = smov 120  }
  0x95   : > { %2052 = vsyncadd (%p2596_p2), [#allocation9], 4294966784  ;;  %1642 = vmatprep.subr.mxu1 %v2079_v0  ;;  %1644 = vmatprep.mubr.msk.f32.mxu1 %vm2080_vm0, %v2079_v0  ;;  %p364_p4 = scmp.lt.s32.totalorder %s2211_s16, 1  ;;  %v2382_v9 = vld [vmem:[%s318_s20] sm:$0xff]  ;;  %v370_v23 = vld [vmem:[#allocation8] sm:$0xff]  ;;  %s2082_s25 = smov 112  }
  0x96   : > { %1657 = vmatprep.subr.mxu0 %v2079_v0  ;;  %1659 = vmatprep.mubr.msk.f32.mxu0 %vm2080_vm0, %v2079_v0  ;;  %v371_v24 = vld [vmem:[#allocation8 + $0x8] sm:$0xff]  ;;  %v372_v26 = vld [vmem:[#allocation8 + $0x10] sm:$0xff]  ;;  %v373_v27 = vld [vmem:[#allocation8 + $0x18] sm:$0xff]  ;;  %v2083_v30 = vmov 0.0|0.0   ;;  %s2084_s7 = smov 104   ;;  %s2599_s10 = sld [smem:[#allocation21_spill]] }
  0x97   : > { %1643 = vmatpush3.xpose.msk.msra.mxu1 %vm381_vm1, %v2360_v1  ;;  %543 = vrot.lane.b32.xlu1 %v2364_v2, %s2081_s19  ;;  %s365_s24 = scalar_select %p364_p4, %s2211_s16, 1  ;;  %v2399_v25 = vpack.i.bf16 %v371_v24, %v370_v23  ;;  %v2403_v28 = vpack.i.bf16 %v373_v27, %v372_v26  ;;  %vm2416_vm2 = vmpackc.low %vm381_vm1, %vm381_vm1  ;;  %v1735_v43 = vpack.c.bf16 %v371_v24, %v370_v23  ;;  %vm1404_vm3 = vcmask 261120  }
  0x98   : > { %1647 = vmatprep.subr.mxu1 %v2079_v0  ;;  %v1739_v47 = vpack.c.bf16 %v373_v27, %v372_v26  ;;  %s1603_s18 = sshll.u32 %s2211_s16, 7  ;;  %s363_s29 = scalar_lea.vmem [#allocation10], %s2335_s1 }
  0x99   : > { %s366_s21 = scalar_lea.vmem %s2552_s3, %s365_s24  ;;  %s1420_s30 = sshll.u32 %s363_s29, 4  ;;  %s2507_s30 = int_to_ptr.vmem [resolvable:$true] %s1420_s30 }
  0x9a   : > { %1645 = vmatmul.mubr.msk.f32.vlgmr.msra.gmra.mrb[0].mxu1 %vm381_vm1, %v2364_v2  ;;  %v2378_v3 = vld [vmem:[%s366_s21] ss:$0 sm:$0xff]  ;;  %s2600_s27 = sld [smem:[#allocation22_spill]]  ;;  %s1407_s28 = scalar_lea.sflag [#allocation4], %s2332_s17 }
  0x9b   : > { %1649 = vmatprep.mubr.msk.f32.mxu1 %vm2080_vm0, %v2079_v0  ;;  %1648 = vmatpush3.msra.mxu1 %v2382_v9  ;;  %s1997_s8 = scalar_lea.vmem %s2507_s30, 128  ;;  %p2601_p12 = scmp.ne.s32.totalorder %s2584_s12, 0 }
  0x9c   : > { %1652 = vmatprep.subr.mxu1 %v2079_v0  ;;  %p1998_p9 = scmp.ne.s32.totalorder %s2507_s30, %s1997_s8  ;;  %s2085_s16 = smov [#allocation10]  }
  0x9d   : > { %s2001_s1 = sshll.u32 %s2085_s16, 4  ;;  %s2002_s1 = int_to_ptr.vmem [resolvable:$false] %s2001_s1 }
  0x9e   : > { %p1999_p6 = pnand %p1998_p9, %p2601_p12  ;;  %s2003_s15 = scalar_lea.vmem %s2002_s1, 256 }
  0x9f   : > { %p2004_p5 = scmp.lt.s32.totalorder %s2507_s30, %s2002_s1  ;;  %p2005_p7 = scmp.lt.s32.totalorder %s2003_s15, %s1997_s8 }
  0xa0   : > { %s2505_s13 = scalar_lea.hbm %s2600_s27, %s1603_s18  ;;  %p2000_p3 = pneg %p1999_p6 }
  0xa1   : > { %p2006_p11 = por %p2005_p7, %p2004_p5 }
  0xa3   : > { %p2007_p0 = pnand %p2006_p11, %p2000_p3 }
 0x109   : > { %v544_v15 = vpop.permute.xlu1 %543 }
 0x16d   : > { %v454_v4 = vpop.f32.mrb[0].mxu1 }
 0x16e   : > { %v455_v5 = vadd.f32 %v2378_v3, %v454_v4  ;;  %v1646_v6 = vpop.f32.mrb[1].mxu1 }
 0x170   : > { %v458_v7 = vmul.f32 0.17677669, %v455_v5 }
 0x172   : > { %v459_v8 = vsel %vm381_vm1, %v458_v7, -inf }
 0x173   : > { %460 = vmax.xlane.f32.xlu0 %v459_v8 }
 0x189   : > { %545 = vrot.lane.b32.xlu0 %v2360_v1, %s2081_s19 }
 0x18d   : > { %632 = vrot.lane.b32.xlu0 %v2382_v9, %s2081_s19 }
 0x200   : > { %v461_v10 = vpop.xlane.xlu0 %460 }
 0x201   : > { %v462_v11 = vsub.f32 %v458_v7, %v461_v10 }
 0x203   : > { %v463_v12 = vmul.f32 1.442695, %v462_v11 }
 0x204   : > { %v546_v13 = vpop.permute.xlu0 %545 }
 0x205   : > { %1863 = vpow2.f32 %v463_v12 }
 0x208   : > { %v633_v29 = vpop.permute.xlu0 %632 }
 0x209   : > { %1658 = vmatpush3.msra.mxu0 %v633_v29 }
 0x20a   : > { %1734 = vmatprep.subr.bf16.mxu0 %v2083_v30 }
 0x20f   : > { %v1864_v14 = vpop.eup %1863 }
 0x210   : > { %1650 = vmatmul.mubr.msk.f32.vlgmr.msra.gmra.mrb[2].mxu1 %vm381_vm1, %v1864_v14  ;;  %v465_v31 = vsel %vm381_vm1, %v1864_v14, 0.0 }
 0x211   : > { %1653 = vmatpush3.xpose.msk.msra.mxu1 %vm381_vm1, %v546_v13  ;;  %1654 = vmatprep.mubr.msk.f32.mxu1 %vm2080_vm0, %v2079_v0 }
 0x212   : > { %1726 = vmatprep.subr.bf16.mxu1 %v2083_v30 }
 0x214   : > { %1655 = vmatmul.mubr.msk.f32.vlgmr.msra.gmra.mrb[4].mxu1 %vm381_vm1, %v544_v15 }
 0x215   : > { %1670 = vmatprep.mubr.msk.f32.mxu1 %vm2080_vm0, %v2079_v0 }
 0x2e3   : > { %v537_v16 = vpop.f32.mrb[2].mxu1 }
 0x2e4   : > { %v1651_v17 = vpop.f32.mrb[3].mxu1 }
 0x2e7   : > { %v617_v18 = vpop.f32.mrb[4].mxu1 }
 0x2e8   : > { %v618_v19 = vadd.f32 %v2378_v3, %v617_v18  ;;  %v1656_v20 = vpop.f32.mrb[5].mxu1 }
 0x2ea   : > { %v621_v21 = vmul.f32 0.17677669, %v618_v19 }
 0x2ec   : > { %v622_v22 = vsel %vm381_vm1, %v621_v21, -inf }
 0x2ed   : > { %623 = vmax.xlane.f32.xlu1 %v622_v22 }
 0x2fe   : > { %1834 = vrot.lane.b32.xlu1 %v2399_v25, %s2081_s19 }
 0x302   : > { %1839 = vrot.lane.b32.xlu1 %v2403_v28, %s2081_s19 }
 0x306   : > { %884 = vrot.lane.b32.xlu1 %v2364_v2, %s2082_s25 }
 0x32a   : > { %466 = vadd.xlane.f32.xlu1 %v465_v31 }
 0x33b   : > { %972 = vrot.lane.b32.xlu1 %v2382_v9, %s2082_s25 }
 0x33f   : > { %1140 = vrot.lane.b32.xlu1 %v2364_v2, %s2084_s7 }
 0x37a   : > { %v624_v32 = vpop.xlane.xlu1 %623 }
 0x37b   : > { %v625_v33 = vsub.f32 %v621_v21, %v624_v32 }
 0x37d   : > { %v626_v34 = vmul.f32 1.442695, %v625_v33 }
 0x37e   : > { %v1835_v35 = vpop.permute.xlu1 %1834 }
 0x37f   : > { %1865 = vpow2.f32 %v626_v34  ;;  %v1837_v36 = vunpack.i.h.bf16 %v1835_v35  ;;  %v1836_v37 = vunpack.i.l.bf16 %v1835_v35 }
 0x381   : > { %v1727_v38 = vpack.c.bf16 %v1837_v36, %v1836_v37 }
 0x382   : > { %v1840_v40 = vpop.permute.xlu1 %1839 }
 0x383   : > { %1729 = vmatpush3.bf16.xpose.msk.msra.mxu1 %vm2416_vm2, %v1727_v38  ;;  %v1842_v41 = vunpack.i.h.bf16 %v1840_v40  ;;  %v1841_v42 = vunpack.i.l.bf16 %v1840_v40 }
 0x384   : > { %1730 = vmatprep.subr.bf16.mxu1 %v2083_v30 }
 0x385   : > { %v1731_v45 = vpack.c.bf16 %v1842_v41, %v1841_v42 }
 0x386   : > { %v885_v48 = vpop.permute.xlu1 %884 }
 0x389   : > { %v1866_v44 = vpop.eup %1865 }
 0x38a   : > { %1660 = vmatmul.mubr.msk.f32.vlgmr.msra.gmra.mrb[0].mxu0 %vm381_vm1, %v1866_v44  ;;  %v628_v46 = vsel %vm381_vm1, %v1866_v44, 0.0 }
 0x38b   : > { %629 = vadd.xlane.f32.xlu0 %v628_v46  ;;  %1737 = vmatpush3.bf16.xpose.msk.msra.mxu0 %vm2416_vm2, %v1735_v43 }
 0x38c   : > { %1738 = vmatprep.subr.bf16.mxu0 %v2083_v30  ;;  %1681 = vmatprep.mubr.msk.f32.mxu0 %vm2080_vm0, %v2079_v0 }
 0x38d   : > { %1733 = vmatpush3.bf16.xpose.msk.msra.mxu1 %vm2416_vm2, %v1731_v45 }
 0x38e   : > { %1684 = vmatprep.subr.mxu1 %v2079_v0 }
 0x393   : > { %1741 = vmatpush3.bf16.xpose.msk.msra.mxu0 %vm2416_vm2, %v1739_v47 }
 0x394   : > { %1689 = vmatprep.subr.mxu0 %v2079_v0 }
 0x3a1   : > { %886 = vrot.lane.b32.xlu0 %v2360_v1, %s2082_s25 }
 0x3b7   : > { %v467_v49 = vpop.xlane.xlu1 %466 }
 0x3b8   : > { %1867 = vrcp.f32 %v467_v49 }
 0x3bb   : > { %v973_v8 = vpop.permute.xlu1 %972 }
 0x3bf   : > { %v1141_v15 = vpop.permute.xlu1 %1140 }
 0x3c2   : > { %v1868_v50 = vpop.eup %1867 }
 0x3c3   : > { %v542_v51 = vmul.f32 %v1868_v50, %v537_v16 }
 0x3c5   : > { %1682 = vmatmul.mubr.msk.f32.vlgmr.msra.gmra.mrb[2].mxu0 %vm381_vm1, %v542_v51 }
 0x3c6   : > { %1691 = vmatprep.mubr.msk.f32.mxu0 %vm2080_vm0, %v2079_v0  ;;  %1690 = vmatpush3.msra.mxu0 %v973_v8 }
 0x3c7   : > { %1705 = vmatprep.subr.mxu0 %v2079_v0 }
 0x418   : > { %v630_v52 = vpop.xlane.xlu0 %629 }
 0x419   : > { %1869 = vrcp.f32 %v630_v52 }
 0x41c   : > { %v887_v57 = vpop.permute.xlu0 %886 }
 0x423   : > { %v1870_v53 = vpop.eup %1869 }
 0x45d   : > { %v704_v54 = vpop.f32.mrb[0].mxu0 }
 0x45e   : > { %v709_v55 = vmul.f32 %v1870_v53, %v704_v54  ;;  %v1661_v56 = vpop.f32.mrb[1].mxu0  ;;  %v1601_v54 = vld [vmem:[%s2599_s10] ss:$0 sm:$0xff] }
 0x460   : > { %1671 = vmatmul.mubr.msk.f32.vlgmr.msra.gmra.mrb[6].mxu1 %vm381_vm1, %v709_v55 }
 0x461   : > { %1685 = vmatpush3.xpose.msk.msra.mxu1 %vm381_vm1, %v887_v57  ;;  %1686 = vmatprep.mubr.msk.f32.mxu1 %vm2080_vm0, %v2079_v0 }
 0x462   : > { %1742 = vmatprep.subr.bf16.mxu1 %v2083_v30 }
 0x464   : > { %1687 = vmatmul.mubr.msk.f32.vlgmr.msra.gmra.mrb[8].mxu1 %vm381_vm1, %v885_v48 }
 0x465   : > { %1702 = vmatprep.mubr.msk.f32.mxu1 %vm2080_vm0, %v2079_v0 }
 0x498   : > { %v880_v58 = vpop.f32.mrb[2].mxu0 }
 0x499   : > { %v1683_v59 = vpop.f32.mrb[3].mxu0 }
 0x533   : > { %v799_v60 = vpop.f32.mrb[6].mxu1 }
 0x534   : > { %v2451_v61 = vadd.f32 %v880_v58, %v799_v60  ;;  %v1672_v62 = vpop.f32.mrb[7].mxu1 }
 0x537   : > { %v958_v63 = vpop.f32.mrb[8].mxu1 }
 0x538   : > { %v959_v4 = vadd.f32 %v2378_v3, %v958_v63  ;;  %v1688_v5 = vpop.f32.mrb[9].mxu1 }
 0x53a   : > { %v962_v6 = vmul.f32 0.17677669, %v959_v4 }
 0x53c   : > { %v963_v7 = vsel %vm381_vm1, %v962_v6, -inf }
 0x53d   : > { %964 = vmax.xlane.f32.xlu0 %v963_v7 }
 0x553   : > { %1142 = vrot.lane.b32.xlu0 %v2360_v1, %s2084_s7 }
 0x557   : > { %1228 = vrot.lane.b32.xlu0 %v2382_v9, %s2084_s7 }
 0x5ca   : > { %v965_v2 = vpop.xlane.xlu0 %964 }
 0x5cb   : > { %v966_v10 = vsub.f32 %v962_v6, %v965_v2 }
 0x5cd   : > { %v967_v11 = vmul.f32 1.442695, %v966_v10 }
 0x5ce   : > { %v1143_v12 = vpop.permute.xlu0 %1142 }
 0x5cf   : > { %1871 = vpow2.f32 %v967_v11 }
 0x5d2   : > { %v1229_v1 = vpop.permute.xlu0 %1228 }
 0x5d9   : > { %v1872_v13 = vpop.eup %1871 }
 0x5da   : > { %1692 = vmatmul.mubr.msk.f32.vlgmr.msra.gmra.mrb[4].mxu0 %vm381_vm1, %v1872_v13  ;;  %v969_v14 = vsel %vm381_vm1, %v1872_v13, 0.0 }
 0x5db   : > { %1706 = vmatpush3.xpose.msk.msra.mxu0 %vm381_vm1, %v1143_v12  ;;  %970 = vadd.xlane.f32.xlu0 %v969_v14 }
 0x5dc   : > { %1707 = vmatprep.mubr.msk.f32.mxu0 %vm2080_vm0, %v2079_v0  ;;  %1710 = vmatprep.subr.mxu0 %v2079_v0 }
 0x5de   : > { %1708 = vmatmul.mubr.msk.f32.vlgmr.msra.gmra.mrb[6].mxu0 %vm381_vm1, %v1141_v15 }
 0x5df   : > { %1711 = vmatpush3.msra.mxu0 %v1229_v1  ;;  %1712 = vmatprep.mubr.msk.f32.mxu0 %vm2080_vm0, %v2079_v0 }
 0x5e0   : > { %1750 = vmatprep.subr.bf16.mxu0 %v2083_v30 }
 0x5f1   : > { %1849 = vrot.lane.b32.xlu0 %v2399_v25, %s2084_s7 }
 0x668   : > { %v971_v31 = vpop.xlane.xlu0 %970 }
 0x66c   : > { %v1850_v40 = vpop.permute.xlu0 %1849 }
 0x66d   : > { %v1852_v41 = vunpack.i.h.bf16 %v1850_v40  ;;  %v1851_v42 = vunpack.i.l.bf16 %v1850_v40 }
 0x66f   : > { %v1751_v43 = vpack.c.bf16 %v1852_v41, %v1851_v42 }
 0x6ad   : > { %v1044_v9 = vpop.f32.mrb[4].mxu0 }
 0x6ae   : > { %v1693_v16 = vpop.f32.mrb[5].mxu0 }
 0x6b1   : > { %v1214_v17 = vpop.f32.mrb[6].mxu0 }
 0x6b2   : > { %v1215_v18 = vadd.f32 %v2378_v3, %v1214_v17  ;;  %v1709_v19 = vpop.f32.mrb[7].mxu0 }
 0x6b4   : > { %v1218_v20 = vmul.f32 0.17677669, %v1215_v18 }
 0x6b6   : > { %v1219_v21 = vsel %vm381_vm1, %v1218_v20, -inf }
 0x6b7   : > { %1220 = vmax.xlane.f32.xlu1 %v1219_v21 }
 0x6c8   : > { %1844 = vrot.lane.b32.xlu1 %v2399_v25, %s2082_s25 }
 0x6cc   : > { %1854 = vrot.lane.b32.xlu1 %v2403_v28, %s2082_s25 }
 0x744   : > { %v1221_v22 = vpop.xlane.xlu1 %1220 }
 0x745   : > { %v1222_v23 = vsub.f32 %v1218_v20, %v1221_v22 }
 0x747   : > { %v1223_v24 = vmul.f32 1.442695, %v1222_v23 }
 0x748   : > { %v1845_v26 = vpop.permute.xlu1 %1844 }
 0x749   : > { %1873 = vpow2.f32 %v1223_v24  ;;  %v1847_v3 = vunpack.i.h.bf16 %v1845_v26  ;;  %v1846_v27 = vunpack.i.l.bf16 %v1845_v26 }
 0x74a   : > { %1875 = vrcp.f32 %v971_v31 }
 0x74b   : > { %v1743_v29 = vpack.c.bf16 %v1847_v3, %v1846_v27 }
 0x74c   : > { %v1855_v32 = vpop.permute.xlu1 %1854 }
 0x74d   : > { %1745 = vmatpush3.bf16.xpose.msk.msra.mxu1 %vm2416_vm2, %v1743_v29  ;;  %v1857_v33 = vunpack.i.h.bf16 %v1855_v32  ;;  %v1856_v34 = vunpack.i.l.bf16 %v1855_v32 }
 0x74e   : > { %1746 = vmatprep.subr.bf16.mxu1 %v2083_v30 }
 0x74f   : > { %v1747_v35 = vpack.c.bf16 %v1857_v33, %v1856_v34 }
 0x753   : > { %v1874_v25 = vpop.eup %1873 }
 0x754   : > { %1713 = vmatmul.mubr.msk.f32.vlgmr.msra.gmra.mrb[8].mxu0 %vm381_vm1, %v1874_v25  ;;  %v1225_v36 = vsel %vm381_vm1, %v1874_v25, 0.0  ;;  %v1876_v37 = vpop.eup %1875 }
 0x755   : > { %1226 = vadd.xlane.f32.xlu1 %v1225_v36  ;;  %1749 = vmatpush3.bf16.xpose.msk.msra.mxu1 %vm2416_vm2, %v1747_v35  ;;  %v1049_v38 = vmul.f32 %v1876_v37, %v1044_v9 }
 0x756   : > { %1723 = vmatprep.mubr.msk.f32.mxu0 %vm2080_vm0, %v2079_v0  ;;  %1753 = vmatpush3.bf16.xpose.msk.msra.mxu0 %vm2416_vm2, %v1751_v43 }
 0x757   : > { %1754 = vmatprep.subr.bf16.mxu0 %v2083_v30 }
 0x75c   : > { %1703 = vmatmul.mubr.msk.f32.vlgmr.msra.gmra.mrb[10].mxu1 %vm381_vm1, %v1049_v38 }
 0x766   : > { %1859 = vrot.lane.b32.xlu1 %v2403_v28, %s2084_s7 }
 0x7e2   : > { %v1227_v44 = vpop.xlane.xlu1 %1226 }
 0x7e3   : > { %1877 = vrcp.f32 %v1227_v44 }
 0x7e6   : > { %v1860_v45 = vpop.permute.xlu1 %1859 }
 0x7e7   : > { %v1862_v0 = vunpack.i.h.bf16 %v1860_v45  ;;  %v1861_v46 = vunpack.i.l.bf16 %v1860_v45 }
 0x7e9   : > { %v1755_v47 = vpack.c.bf16 %v1862_v0, %v1861_v46 }
 0x7eb   : > { %1757 = vmatpush3.bf16.xpose.msk.msra.mxu0 %vm2416_vm2, %v1755_v47 }
 0x7ed   : > { %v1878_v48 = vpop.eup %1877 }
 0x827   : > { %v1300_v49 = vpop.f32.mrb[8].mxu0 }
 0x828   : > { %v1305_v28 = vmul.f32 %v1878_v48, %v1300_v49  ;;  %v1714_v50 = vpop.f32.mrb[9].mxu0 }
 0x82a   : > { %1724 = vmatmul.mubr.msk.f32.vlgmr.msra.gmra.mrb[10].mxu0 %vm381_vm1, %v1305_v28 }
 0x82f   : > { %v1135_v51 = vpop.f32.mrb[10].mxu1 }
 0x830   : > { %v1139_v30 = vadd.f32 %v1135_v51, %v2451_v61  ;;  %v1704_v52 = vpop.f32.mrb[11].mxu1 }
 0x8fd   : > { %v1391_v53 = vpop.f32.mrb[10].mxu0 }
 0x8fe   : > { %v1395_v39 = vadd.f32 %v1391_v53, %v1139_v30  ;;  %v1725_v55 = vpop.f32.mrb[11].mxu0 }
 0x900   : > { %v1403_v56 = vadd.f32 %v1601_v54, %v1395_v39 }
 0x902   : > { %1405 = vst.msk [vmem:[%s363_s29] sm:$0xff] %vm1404_vm3, %v1403_v56 }
 0x903   : > { %2010 = shalt.err (!%p2007_p0)
}
 0x904   : > { %s2011_s17 = scalar_lea.hbm %s2505_s13, 128  ;;  %s2015_s24 = scalar_lea.hbm %s2600_s27, 256 }
 0x905   : > { %p2012_p13 = scmp.ne.s32.totalorder %s2505_s13, %s2011_s17  ;;  %p2016_p1 = scmp.lt.u32.totalorder %s2505_s13, %s2600_s27 }
 0x906   : > { %p2017_p2 = scmp.lt.u32.totalorder %s2015_s24, %s2011_s17  ;;  %p2019_p9 = scmp.lt.u32.totalorder %s2011_s17, %s2505_s13 }
 0x907   : > { %p2013_p10 = pnand %p2012_p13, %p2601_p12 }
 0x908   : > { %p2018_p4 = por %p2017_p2, %p2016_p1 }
 0x909   : > { %p2014_p8 = pneg %p2013_p10 }
 0x90a   : > { %p2020_p6 = por %p2019_p9, %p2018_p4 }
 0x90c   : > { %p2021_p3 = pnand %p2020_p6, %p2014_p8 }
 0x90e   : > { %2024 = shalt.err (!%p2021_p3)
}
 0x90f   : > { %1768 = dma.vmem_to_hbm [thread:$0]  (%p2601_p12), %s2507_s30, 128, %s2505_s13, %s1407_s28  }
 0x910 PF: > { %s2602_s21 = sld [smem:[#allocation15_spill]]  ;;  %s2603_s25 = sld [smem:[#allocation19_spill]] }
 0x911   : > { %s2604_s7 = sld [smem:[#allocation16_spill]] }
 0x916   : > { %s1432_s14 = sand.u32 1, %s2602_s21   ;;  %p2605_p5 = scmp.ne.s32.totalorder %s2603_s25, 0 }
 0x917   : > { %p2606_p7 = scmp.ge.s32.totalorder %s2604_s7, 2  ;;  %s1433_s9 = scalar_lea.sflag [#allocation4], %s1432_s14 }
 0x919   : > { %p1785_p11 = pnand %p2606_p7, %p2605_p5 }
 0x91b   : > { %2054 = dma.done.wait (!%p1785_p11), %s1433_s9, 128  }
 0x91c   : > { %2056 = vsyncadd (!%p1785_p11), %s1433_s9, 4294967168  ;;  %s2607_s24 = sld [smem:[#allocation17_spill]]  ;;  %s2608_s10 = sld [smem:[#allocation18_spill]] }
 0x91d   : > { %s2609_s21 = smov %s2063_s22  ;;  %s2610_s22 = smov %s2067_s23 }
 0x922   : > { %p23_p0 = scmp.ge.s32.totalorder %s2607_s24, 4   ;;  %s2611_s23 = smov %s2608_s10 }
 0x924   :  { %25 = sbr.rel (!%p23_p0) target bundleno = 12 (0xc), region = 120 }
 0x92b   :  { %1438 = vsyncpa [#allocation3], 1 }
 0x92c   :  { %1440 = vsyncpa [#allocation3 + $0x1], 1 }
 0x92d   :  { %1441 = vsyncpa [#allocation6], 1 }
 0x92e   :  { %1443 = vsyncpa [#allocation6 + $0x1], 1 }
 0x92f   :  { %1444 = vsyncpa [#allocation9], 1 }
 0x930   :  { %1445 = vsyncpa [#allocation4], 1 }
 0x931   :  { %1447 = vsyncpa [#allocation4 + $0x1], 1 }

</bundles_post_ra>
